<compile_context>
chip_gen: v7x
topology: tpu7x:2x2x1
jax: 0.10.0
libtpu: 0.0.40
codegen_flags: <defaults>
</compile_context>

<pallas_src>
import functools

import jax
import jax.numpy as jnp
from jax import lax
from jax.experimental import pallas as pl
from jax.experimental.pallas import tpu as pltpu


def _cls_head_kernel(p_ref, w1_ref, b1_ref, w2_ref, b2_ref, o_ref, *, C2, HW):
    # p_ref block: (1, 9*Cin, HW) im2col patches for this batch item.
    patches = p_ref[0]                                            # (9*Cin, HW)

    # conv3x3 as one matmul, + bias, ReLU.   (MXU precision: default; set
    # precision=lax.Precision.HIGHEST here and in the reference for exact
    # f32 parity if ever required.)
    y1 = jnp.dot(w1_ref[...], patches,
                 preferred_element_type=jnp.float32)              # (C1, HW)
    y1 = jnp.maximum(y1 + b1_ref[...], 0.0)

    # conv1x1 with both BatchNorms folded into (w2, b2).
    y2 = jnp.dot(w2_ref[...], y1,
                 preferred_element_type=jnp.float32) + b2_ref[...]  # (C2, HW)

    # channel-wise max + first-occurrence argmax -> one-hot selection
    m = jnp.max(y2, axis=0, keepdims=True)                        # (1, HW)
    ch = lax.broadcasted_iota(jnp.int32, (C2, HW), 0)             # channel ids
    masked = jnp.where(y2 == m, ch, C2)
    first_idx = jnp.min(masked, axis=0, keepdims=True)            # torch tie rule
    sel = (ch == first_idx).astype(jnp.float32)                   # (C2, HW)

    out = jax.nn.sigmoid(m) * sel                                 # broadcast over C2
    o_ref[...] = out.reshape(1, C2, HW)


def make_params(key, in_channels=5, reduced=12):
    """Deterministic parameters matching ClsHead._initialize_weights()."""
    k1, k2 = jax.random.split(key)
    eps = 1e-5
    # PyTorch Conv2d weight layout (out, in, kh, kw), N(0, 0.01); transpose to HWIO.
    w1_t = 0.01 * jax.random.normal(k1, (reduced, in_channels, 3, 3), jnp.float32)
    w1 = jnp.transpose(w1_t, (2, 3, 1, 0))                  # (3, 3, Cin, C1)
    b1 = jnp.zeros((1, reduced), jnp.float32)
    w2_t = 0.01 * jax.random.normal(k2, (in_channels, reduced, 1, 1), jnp.float32)
    w2 = jnp.transpose(w2_t, (2, 3, 1, 0))[0, 0]            # (C1, C2)
    b2 = jnp.zeros((1, in_channels), jnp.float32)
    # BatchNorm eval-mode fold: scale = gamma/sqrt(var+eps), shift = beta - mean*scale
    s1 = jnp.full((1, reduced), 1.0 / jnp.sqrt(1.0 + eps), jnp.float32)
    t1 = jnp.zeros((1, reduced), jnp.float32)
    s2 = jnp.full((1, in_channels), 1.0 / jnp.sqrt(1.0 + eps), jnp.float32)
    t2 = jnp.zeros((1, in_channels), jnp.float32)
    return dict(w1=w1, b1=b1, s1=s1, t1=t1, w2=w2, b2=b2, s2=s2, t2=t2)


@jax.jit
def cls_head_forward(x_nchw, p):
    N, Cin, H, W = x_nchw.shape
    C1 = p["w1"].shape[-1]
    C2 = p["w2"].shape[-1]
    HW = H * W
    K9 = 9 * Cin

    # ---- layout plumbing (XLA side) -------------------------------------
    x = x_nchw.astype(jnp.float32)
    x_pad = jnp.pad(x, ((0, 0), (0, 0), (1, 1), (1, 1)))          # pad=1, 3x3 conv
    # im2col: taps ordered dy-major, dx-minor, then Cin  -> (N, 9*Cin, HW)
    taps = [x_pad[:, :, dy:dy + H, dx:dx + W]
            for dy in range(3) for dx in range(3)]
    patches = jnp.stack(taps, axis=1).reshape(N, K9, HW)

    # conv3x3 weight as (C1, 9*Cin), same tap ordering; bias as column.
    w1_mat = jnp.transpose(p["w1"], (3, 0, 1, 2)).reshape(C1, K9)
    b1_col = p["b1"].reshape(C1, 1)

    # fold BN1 and BN2 into the 1x1 conv (eval-mode, bit-equivalent):
    #   ((relu*s1 + t1) @ w2 + b2) * s2 + t2
    #     = relu @ (s1[:,None]*w2*s2[None,:]) + ((t1@w2 + b2)*s2 + t2)
    s1 = p["s1"].reshape(C1)
    t1 = p["t1"].reshape(C1)
    s2 = p["s2"].reshape(C2)
    t2 = p["t2"].reshape(C2)
    w2 = p["w2"]                                                  # (C1, C2)
    w2f = (w2 * s1[:, None] * s2[None, :]).T                      # (C2, C1)
    b2f = ((t1 @ w2 + p["b2"].reshape(C2)) * s2 + t2).reshape(C2, 1)

    kernel = functools.partial(_cls_head_kernel, C2=C2, HW=HW)

    def full2(shape):
        return pl.BlockSpec(shape, lambda n: (0, 0))

    out_flat = pl.pallas_call(
        kernel,
        out_shape=jax.ShapeDtypeStruct((N, C2, HW), jnp.float32),
        grid=(N,),
        in_specs=[
            pl.BlockSpec((1, K9, HW), lambda n: (n, 0, 0)),       # patches
            full2((C1, K9)),                                      # conv3x3 weight
            full2((C1, 1)),                                       # conv3x3 bias
            full2((C2, C1)),                                      # folded 1x1 weight
            full2((C2, 1)),                                       # folded 1x1 bias
        ],
        out_specs=pl.BlockSpec((1, C2, HW), lambda n: (n, 0, 0)),
        compiler_params=pltpu.CompilerParams(
            dimension_semantics=("parallel",)),
    )(patches, w1_mat, b1_col, w2f, b2f)

    return out_flat.reshape(N, C2, H, W)                          # free reshape


def cls_head_reference(x_nchw, p):
    """Pure-JAX reference (unfolded params) for correctness checking."""
    x = jnp.transpose(x_nchw, (0, 2, 3, 1)).astype(jnp.float32)
    y = lax.conv_general_dilated(x, p["w1"], (1, 1), "SAME",
                                 dimension_numbers=("NHWC", "HWIO", "NHWC"))
    y = y + p["b1"].reshape(1, 1, 1, -1)
    y = jnp.maximum(y, 0.0)
    y = y * p["s1"].reshape(1, 1, 1, -1) + p["t1"].reshape(1, 1, 1, -1)
    y = jnp.einsum("nhwc,cd->nhwd", y, p["w2"]) + p["b2"].reshape(1, 1, 1, -1)
    y = y * p["s2"].reshape(1, 1, 1, -1) + p["t2"].reshape(1, 1, 1, -1)
    m = jnp.max(y, axis=-1, keepdims=True)
    idx = jnp.argmax(y, axis=-1, keepdims=True)
    sel = (lax.broadcasted_iota(jnp.int32, y.shape, 3) == idx).astype(jnp.float32)
    out = jax.nn.sigmoid(m) * sel
    return jnp.transpose(out, (0, 3, 1, 2))


if __name__ == "__main__":
    key = jax.random.PRNGKey(0)
    kx, kp = jax.random.split(key)

    N, Cin, H, W = 2, 5, 16, 16          # ClsHead(in_channels=5): 5 stage maps
    x = jax.random.normal(kx, (N, Cin, H, W), jnp.float32)
    params = make_params(kp, in_channels=Cin, reduced=12)

    out = jax.block_until_ready(cls_head_forward(x, params))
    ref = jax.block_until_ready(cls_head_reference(x, params))

    assert out.shape == (N, Cin, H, W)
    assert out.dtype == jnp.float32
    assert jnp.allclose(out, ref, atol=1e-5, rtol=1e-5), "mismatch vs reference"
    # TODO(synk): maxmode='softmax' branch of ClsHead is not implemented (module default is 'max').
    print("KERNEL_OK")
</pallas_src>

<mosaic_0001>
module attributes {stable_mosaic.version = 11 : i64} {
  func.func @_cls_head_kernel(%arg0: i32, %arg1: memref<1x45x256xf32, #tpu.memory_space<vmem>>, %arg2: memref<12x45xf32, #tpu.memory_space<vmem>>, %arg3: memref<12x1xf32, #tpu.memory_space<vmem>>, %arg4: memref<5x12xf32, #tpu.memory_space<vmem>>, %arg5: memref<5x1xf32, #tpu.memory_space<vmem>>, %arg6: memref<1x5x256xf32, #tpu.memory_space<vmem>>) attributes {dimension_semantics = [#tpu.dimension_semantics<parallel>], iteration_bounds = array<i64: 2>, scalar_prefetch = 0 : i64, scratch_operands = 0 : i64, tpu.core_type = #tpu.core_type<tc>, window_params = [{transform_indices = @transform_0, window_bounds = array<i64: 1, 45, 256>}, {pipeline_mode = #tpu.pipeline_mode<synchronous>, transform_indices = @transform_1, window_bounds = array<i64: 12, 45>}, {pipeline_mode = #tpu.pipeline_mode<synchronous>, transform_indices = @transform_2, window_bounds = array<i64: 12, 1>}, {pipeline_mode = #tpu.pipeline_mode<synchronous>, transform_indices = @transform_3, window_bounds = array<i64: 5, 12>}, {pipeline_mode = #tpu.pipeline_mode<synchronous>, transform_indices = @transform_4, window_bounds = array<i64: 5, 1>}, {transform_indices = @transform_5, window_bounds = array<i64: 1, 5, 256>}]} {
    %c0 = arith.constant 0 : index
    %c0_0 = arith.constant 0 : index
    %c0_1 = arith.constant 0 : index
    %0 = vector.load %arg1[%c0, %c0_0, %c0_1] : memref<1x45x256xf32, #tpu.memory_space<vmem>>, vector<1x45x256xf32>
    %1 = vector.shape_cast %0 : vector<1x45x256xf32> to vector<45x256xf32>
    %c0_2 = arith.constant 0 : index
    %c0_3 = arith.constant 0 : index
    %2 = vector.load %arg2[%c0_2, %c0_3] : memref<12x45xf32, #tpu.memory_space<vmem>>, vector<12x45xf32>
    %cst = arith.constant dense<0.000000e+00> : vector<12x256xf32>
    %3 = tpu.matmul %2, %1, %cst {dimension_numbers = #tpu.dot_dimension_numbers<[1], [0], [0], [1], [0, 0, 1, 1], [], []>} : vector<12x45xf32>, vector<45x256xf32>, vector<12x256xf32> -> vector<12x256xf32>
    %c0_4 = arith.constant 0 : index
    %c0_5 = arith.constant 0 : index
    %4 = vector.load %arg3[%c0_4, %c0_5] : memref<12x1xf32, #tpu.memory_space<vmem>>, vector<12x1xf32>
    %5 = vector.broadcast %4 : vector<12x1xf32> to vector<12x256xf32>
    %6 = arith.addf %3, %5 : vector<12x256xf32>
    %cst_6 = arith.constant 0.000000e+00 : f32
    %7 = vector.broadcast %cst_6 : f32 to vector<12x256xf32>
    %8 = arith.maximumf %6, %7 : vector<12x256xf32>
    %c0_7 = arith.constant 0 : index
    %c0_8 = arith.constant 0 : index
    %9 = vector.load %arg4[%c0_7, %c0_8] : memref<5x12xf32, #tpu.memory_space<vmem>>, vector<5x12xf32>
    %cst_9 = arith.constant dense<0.000000e+00> : vector<5x256xf32>
    %10 = tpu.matmul %9, %8, %cst_9 {dimension_numbers = #tpu.dot_dimension_numbers<[1], [0], [0], [1], [0, 0, 1, 1], [], []>} : vector<5x12xf32>, vector<12x256xf32>, vector<5x256xf32> -> vector<5x256xf32>
    %c0_10 = arith.constant 0 : index
    %c0_11 = arith.constant 0 : index
    %11 = vector.load %arg5[%c0_10, %c0_11] : memref<5x1xf32, #tpu.memory_space<vmem>>, vector<5x1xf32>
    %12 = vector.broadcast %11 : vector<5x1xf32> to vector<5x256xf32>
    %13 = arith.addf %10, %12 : vector<5x256xf32>
    %cst_12 = arith.constant dense<0xFF800000> : vector<256xf32>
    %14 = vector.multi_reduction <maximumf>, %13, %cst_12 [0] : vector<5x256xf32> to vector<256xf32>
    %15 = vector.shape_cast %14 : vector<256xf32> to vector<1x256xf32>
    %16 = tpu.iota {dimensions = array<i32: 0>} : vector<5x256xi32>
    %17 = vector.broadcast %15 : vector<1x256xf32> to vector<5x256xf32>
    %18 = arith.cmpf oeq, %13, %17 : vector<5x256xf32>
    %c5_i32 = arith.constant 5 : i32
    %19 = vector.broadcast %c5_i32 : i32 to vector<5x256xi32>
    %20 = arith.select %18, %16, %19 : vector<5x256xi1>, vector<5x256xi32>
    %cst_13 = arith.constant dense<2147483647> : vector<256xi32>
    %21 = vector.multi_reduction <minsi>, %20, %cst_13 [0] : vector<5x256xi32> to vector<256xi32>
    %22 = vector.shape_cast %21 : vector<256xi32> to vector<1x256xi32>
    %23 = vector.broadcast %22 : vector<1x256xi32> to vector<5x256xi32>
    %24 = arith.cmpi eq, %16, %23 : vector<5x256xi32>
    %25 = arith.extui %24 : vector<5x256xi1> to vector<5x256xi32>
    %26 = arith.sitofp %25 : vector<5x256xi32> to vector<5x256xf32>
    %27 = arith.negf %15 : vector<1x256xf32>
    %28 = math.exp %27 : vector<1x256xf32>
    %cst_14 = arith.constant 1.000000e+00 : f32
    %29 = vector.broadcast %cst_14 : f32 to vector<1x256xf32>
    %30 = arith.addf %29, %28 : vector<1x256xf32>
    %31 = arith.divf %29, %30 : vector<1x256xf32>
    %32 = vector.broadcast %31 : vector<1x256xf32> to vector<5x256xf32>
    %33 = arith.mulf %32, %26 : vector<5x256xf32>
    %34 = vector.shape_cast %33 : vector<5x256xf32> to vector<1x5x256xf32>
    %c0_15 = arith.constant 0 : index
    %c0_16 = arith.constant 0 : index
    %c0_17 = arith.constant 0 : index
    %35 = vector.load %arg6[%c0_15, %c0_16, %c0_17] : memref<1x5x256xf32, #tpu.memory_space<vmem>>, vector<1x5x256xf32>
    tpu.vector_store %arg6[%c0_15, %c0_16, %c0_17], %34 {strides = array<i32>} : memref<1x5x256xf32, #tpu.memory_space<vmem>>, vector<1x5x256xf32>,
    return
  }
  func.func @transform_0(%arg0: i32) -> (i32, i32, i32) {
    %c0_i32 = arith.constant 0 : i32
    %c0_i32_0 = arith.constant 0 : i32
    %c0_i32_1 = arith.constant 0 : i32
    return %arg0, %c0_i32, %c0_i32_0 : i32, i32, i32
  }
  func.func @transform_1(%arg0: i32) -> (i32, i32) {
    %c0_i32 = arith.constant 0 : i32
    %c0_i32_0 = arith.constant 0 : i32
    %c0_i32_1 = arith.constant 0 : i32
    return %c0_i32, %c0_i32_0 : i32, i32
  }
  func.func @transform_2(%arg0: i32) -> (i32, i32) {
    %c0_i32 = arith.constant 0 : i32
    %c0_i32_0 = arith.constant 0 : i32
    %c0_i32_1 = arith.constant 0 : i32
    return %c0_i32, %c0_i32_0 : i32, i32
  }
  func.func @transform_3(%arg0: i32) -> (i32, i32) {
    %c0_i32 = arith.constant 0 : i32
    %c0_i32_0 = arith.constant 0 : i32
    %c0_i32_1 = arith.constant 0 : i32
    return %c0_i32, %c0_i32_0 : i32, i32
  }
  func.func @transform_4(%arg0: i32) -> (i32, i32) {
    %c0_i32 = arith.constant 0 : i32
    %c0_i32_0 = arith.constant 0 : i32
    %c0_i32_1 = arith.constant 0 : i32
    return %c0_i32, %c0_i32_0 : i32, i32
  }
  func.func @transform_5(%arg0: i32) -> (i32, i32, i32) {
    %c0_i32 = arith.constant 0 : i32
    %c0_i32_0 = arith.constant 0 : i32
    %c0_i32_1 = arith.constant 0 : i32
    return %arg0, %c0_i32, %c0_i32_0 : i32, i32, i32
  }
}

</mosaic_0001>

<bundles_post_ra>
// kernel: cls_head_forward.1
= control target key start
LH: loop header
LB: loop body
LE: loop exit
PB: predicated region body
PF: predicated region fallthrough
CT: control target
= control target key end

     0   :  { %s657_s18 = smov 0   ;;  %s708_s0 = inlined_call_operand.vmem [shape: f32[2,45,256], index: 0, kind: input, shape index: {}]   ;;  %s709_s1 = inlined_call_operand.vmem [shape: f32[12,45], index: 1, kind: input, shape index: {}]   ;;  %s710_s2 = inlined_call_operand.vmem [shape: f32[12,1], index: 2, kind: input, shape index: {}]   ;;  %s711_s3 = inlined_call_operand.vmem [shape: f32[5,12], index: 3, kind: input, shape index: {}]   ;;  %s712_s4 = inlined_call_operand.vmem [shape: f32[5,1], index: 4, kind: input, shape index: {}]   ;;  %s713_s5 = inlined_call_operand.vmem [shape: f32[2,5,256], index: 5, kind: output, shape index: {}]  }
   0x1 LB: > { %s552_s19 = sadd.s32 4294967295, %s622_s18   ;;  %p556_p0 = scmp.ge.s32.totalorder %s622_s18, 1  ;;  %s622_s18 = sphi %s657_s18, %s15_s18  }
   0x2   : > { %p187_p1 = scmp.lt.s32.totalorder %s622_s18, 3 }
   0x4   : > { %p188_p2 = pnand %p556_p0, %p187_p1 }
   0x5   : > { %p215_p3 = scmp.lt.s32.totalorder (!%p188_p2), %s552_s19, 1  ;;  %v624_v0 = vmov (!%p188_p2), 0.0   ;;  %v239_v1 = vld [vmem:[%s710_s2] sm:$0xff] (!%p188_p2)  ;;  %v625_v2 = vmov (!%p188_p2), 0   ;;  %v240_v3 = vld [vmem:[%s710_s2 + $0x8] sm:$0xf] (!%p188_p2)  ;;  %v449_v54 = vlaneseq (!%p188_p2) }
   0x6   : > { %191 = sbr.rel (%p188_p2) target bundleno = 516 (0x204), region = 40  ;;  %329 = vmatprep.mubr.f32.mxu0 (!%p188_p2), %v624_v0  ;;  %428 = vmatprep.mubr.f32.mxu1 (!%p188_p2), %v624_v0  ;;  %vm258_vm0 = vcmask (!%p188_p2), 1044480   ;;  %vm626_vm1 = vmmov (!%p188_p2), 1   ;;  %v237_v22 = vld [vmem:[%s709_s1] sm:$0xff] (!%p188_p2)  ;;  %vm251_vm3 = vcmask (!%p188_p2), 367616   ;;  %vm357_vm4 = vcmask (!%p188_p2), 1043456  }
   0x7   : > { %606 = vset.pattern.permute.xlu0 (!%p188_p2), %v625_v2  ;;  %607 = vset.pattern.permute.xlu1 (!%p188_p2), %v625_v2  ;;  %vm583_vm2 = vmpackc.low (!%p188_p2), %vm258_vm0, %vm626_vm1  ;;  %v238_v23 = vld [vmem:[%s709_s1 + $0x8] sm:$0xf] (!%p188_p2)  ;;  %v347_v24 = vld [vmem:[%s712_s4] sm:$0x1f] (!%p188_p2)  ;;  %vm353_vm6 = vcmask (!%p188_p2), 97280   ;;  %v450_v59 = vshrl.u32 (!%p188_p2), %v449_v54, 7 }
   0x8   : > { %243 = vperm.xlu0 (!%p188_p2), %606, %v239_v1   ;;  %350 = vperm.xlu1 (!%p188_p2), %607, %v347_v24   ;;  %vm589_vm5 = vmpackc.low (!%p188_p2), %vm357_vm4, %vm626_vm1  ;;  %v346_v41 = vld [vmem:[%s711_s3] sm:$0x1f] (!%p188_p2) }
   0xc   : > { %248 = vperm.xlu0 (!%p188_p2), %606, %v240_v3  }
   0xd   : > { %s715_s19 = smov (!%p215_p3, %s552_s19), 1 }
   0xe   : > { %s594_s22 = smul.u32 96, %s715_s19  ;;  %s573_s11 = sshll.u32 %s715_s19, 4 }
   0xf   : > { %s224_s14 = scalar_lea.vmem %s713_s5, %s573_s11 }
  0x10   : > { %s219_s27 = scalar_lea.vmem %s708_s0, %s594_s22 }
  0x11   : > { %v226_v4 = vld [vmem:[%s219_s27 + $0x8] sm:$0xff]  ;;  %v228_v5 = vld [vmem:[%s219_s27 + $0x18] sm:$0xff]  ;;  %v225_v6 = vld [vmem:[%s219_s27] sm:$0xff] }
  0x12   : > { %v574_v7 = vpack.c.bf16 %v228_v5, %v226_v4  ;;  %v227_v8 = vld [vmem:[%s219_s27 + $0x10] sm:$0xff]  ;;  %v230_v9 = vld [vmem:[%s219_s27 + $0x28] sm:$0xff]  ;;  %v232_v10 = vld [vmem:[%s219_s27 + $0x38] sm:$0xff] }
  0x13   : > { %v576_v11 = vpack.c.bf16 %v227_v8, %v225_v6  ;;  %v578_v12 = vpack.c.bf16 %v232_v10, %v230_v9  ;;  %v229_v13 = vld [vmem:[%s219_s27 + $0x20] sm:$0xff]  ;;  %v231_v14 = vld [vmem:[%s219_s27 + $0x30] sm:$0xff]  ;;  %v234_v15 = vld [vmem:[%s219_s27 + $0x48] sm:$0xff] }
  0x14   : > { %575 = vmatprep.subr.bf16.mxu0 %v574_v7  ;;  %v236_v16 = vld [vmem:[%s219_s27 + $0x58] sm:$0x1f]  ;;  %v580_v17 = vpack.c.bf16 %v231_v14, %v229_v13  ;;  %v233_v19 = vld [vmem:[%s219_s27 + $0x40] sm:$0xff]  ;;  %v235_v20 = vld [vmem:[%s219_s27 + $0x50] sm:$0x1f] }
  0x15   : > { %577 = vmatpush1.bf16.msra.mxu0 %v576_v11  ;;  %v582_v18 = vpack.c.bf16 %v236_v16, %v234_v15  ;;  %v585_v21 = vpack.c.bf16 %v235_v20, %v233_v19 }
  0x16   : > { %579 = vmatprep.subr.bf16.mxu0 %v578_v12 }
  0x19   : > { %581 = vmatpush1.bf16.msra.mxu0 %v580_v17 }
  0x1a   : > { %584 = vmatprep.subr.msk.bf16.mxu0 %vm583_vm2, %v582_v18 }
  0x1d   : > { %587 = vmatpush1.bf16.msk.msra.mxu0 %vm583_vm2, %v585_v21 }
  0x20   : > { %562 = vmatmul.mubr.msk.f32.vlgmr.msra.gmra.mrb[0].mxu0 %vm251_vm3, %v237_v22 }
  0x21   : > { %335 = vmatprep.mubr.f32.mxu0 %v624_v0 }
  0x24   : > { %563 = vmatmul.mubr.msk.f32.gmra.mrb[2].mxu0 %vm251_vm3, %v238_v23 }
  0x87   : > { %v244_v25 = vpop.permute.xlu0 %243  ;;  %v351_v42 = vpop.permute.xlu1 %350 }
  0x8b   : > { %v249_v29 = vpop.permute.xlu0 %248 }
  0xf3   : > { %v331_v26 = vpop.f32.mrb[0].mxu0 }
  0xf4   : > { %v333_v27 = vpop.f32.mrb[1].mxu0  ;;  %v332_v28 = vadd.f32 %v331_v26, %v244_v25 }
  0xf5   : > { %v334_v30 = vadd.f32 %v333_v27, %v244_v25 }
  0xf6   : > { %v342_v35 = vmax.f32 %v332_v28, 0.0 }
  0xf7   : > { %v337_v31 = vpop.f32.mrb[2].mxu0  ;;  %v343_v37 = vmax.f32 %v334_v30, 0.0 }
  0xf8   : > { %v338_v32 = vadd.f32 %v337_v31, %v249_v29  ;;  %v339_v33 = vpop.f32.mrb[3].mxu0 }
  0xf9   : > { %v340_v34 = vadd.f32 %v339_v33, %v249_v29 }
  0xfa   : > { %v344_v36 = vmax.f32 %v338_v32, 0.0 }
  0xfb   : > { %v345_v38 = vmax.f32 %v340_v34, 0.0 }
  0xfc   : > { %v591_v39 = vpack.c.bf16 %v344_v36, %v342_v35 }
  0xfd   : > { %v588_v40 = vpack.c.bf16 %v345_v38, %v343_v37 }
  0xff   : > { %590 = vmatprep.subr.msk.bf16.mxu1 %vm589_vm5, %v588_v40 }
 0x100   : > { %593 = vmatpush1.bf16.msk.msra.mxu1 %vm589_vm5, %v591_v39 }
 0x103   : > { %566 = vmatmul.mubr.msk.f32.vlgmr.msra.gmra.mrb[0].mxu1 %vm353_vm6, %v346_v41 }
 0x1d6   : > { %v430_v43 = vpop.f32.mrb[0].mxu1 }
 0x1d7   : > { %v431_v44 = vadd.f32 %v430_v43, %v351_v42  ;;  %v432_v45 = vpop.f32.mrb[1].mxu1 }
 0x1d8   : > { %v433_v46 = vadd.f32 %v432_v45, %v351_v42 }
 0x1d9   : > { %v435_v47 = vsel %vm258_vm0, %v431_v44, -inf }
 0x1da   : > { %v436_v48 = vrot.slane %v435_v47, 4  ;;  %v442_v49 = vsel %vm258_vm0, %v433_v46, -inf }
 0x1db   : > { %v443_v50 = vrot.slane %v442_v49, 4 }
 0x1dc   : > { %v437_v51 = vmax.f32 %v435_v47, %v436_v48 }
 0x1dd   : > { %v444_v52 = vmax.f32 %v442_v49, %v443_v50 }
 0x1de   : > { %v438_v53 = vrot.slane %v437_v51, 2 }
 0x1df   : > { %v445_v55 = vrot.slane %v444_v52, 2 }
 0x1e0   : > { %v439_v56 = vmax.f32 %v437_v51, %v438_v53 }
 0x1e1   : > { %v446_v57 = vmax.f32 %v444_v52, %v445_v55 }
 0x1e2   : > { %v440_v58 = vrot.slane %v439_v56, 1 }
 0x1e3   : > { %v447_v60 = vrot.slane %v446_v57, 1 }
 0x1e4   : > { %v441_v61 = vmax.f32 %v439_v56, %v440_v58 }
 0x1e5   : > { %v448_v62 = vmax.f32 %v446_v57, %v447_v60 }
 0x1e6   : > { %vm451_vm7 = vcmp.eq.f32.partialorder %v431_v44, %v441_v61  ;;  %v569_v63 = vmul.f32 -1.442695, %v441_v61 }
 0x1e7   : > { %v453_v1 = vsel %vm451_vm7, %v450_v59, 5  ;;  %vm452_vm8 = vcmp.eq.f32.partialorder %v433_v46, %v448_v62  ;;  %v570_v2 = vmul.f32 -1.442695, %v448_v62 }
 0x1e8   : > { %v455_v3 = vsel %vm258_vm0, %v453_v1, 2147483647  ;;  %608 = vpow2.f32 %v569_v63  ;;  %v454_v4 = vsel %vm452_vm8, %v450_v59, 5 }
 0x1e9   : > { %v456_v5 = vrot.slane %v455_v3, 4  ;;  %v465_v6 = vsel %vm258_vm0, %v454_v4, 2147483647  ;;  %610 = vpow2.f32 %v570_v2 }
 0x1ea   : > { %v466_v7 = vrot.slane %v465_v6, 4 }
 0x1eb   : > { %vm457_vm9 = vcmp.lt.s32.totalorder %v455_v3, %v456_v5 }
 0x1ec   : > { %v458_v8 = vsel %vm457_vm9, %v455_v3, %v456_v5  ;;  %vm467_vm10 = vcmp.lt.s32.totalorder %v465_v6, %v466_v7 }
 0x1ed   : > { %v459_v9 = vrot.slane %v458_v8, 2  ;;  %v468_v10 = vsel %vm467_vm10, %v465_v6, %v466_v7 }
 0x1ee   : > { %v469_v11 = vrot.slane %v468_v10, 2 }
 0x1ef   : > { %vm460_vm11 = vcmp.lt.s32.totalorder %v458_v8, %v459_v9 }
 0x1f0   : > { %v461_v12 = vsel %vm460_vm11, %v458_v8, %v459_v9  ;;  %vm470_vm12 = vcmp.lt.s32.totalorder %v468_v10, %v469_v11 }
 0x1f1   : > { %v471_v13 = vsel %vm470_vm12, %v468_v10, %v469_v11  ;;  %v462_v15 = vrot.slane %v461_v12, 1 }
 0x1f2   : > { %v609_v14 = vpop.eup %608  ;;  %v472_v18 = vrot.slane %v471_v13, 1 }
 0x1f3   : > { %v611_v16 = vpop.eup %610  ;;  %v487_v17 = vadd.f32 1.0, %v609_v14  ;;  %vm463_vm13 = vcmp.lt.s32.totalorder %v461_v12, %v462_v15 }
 0x1f4   : > { %v488_v19 = vadd.f32 1.0, %v611_v16  ;;  %vm473_vm14 = vcmp.lt.s32.totalorder %v471_v13, %v472_v18  ;;  %v464_v20 = vsel %vm463_vm13, %v461_v12, %v462_v15 }
 0x1f5   : > { %612 = vrcp.f32 %v487_v17  ;;  %v474_v21 = vsel %vm473_vm14, %v471_v13, %v472_v18  ;;  %vm475_vm15 = vcmp.eq.s32.totalorder %v450_v59, %v464_v20 }
 0x1f6   : > { %614 = vrcp.f32 %v488_v19  ;;  %vm476_vm0 = vcmp.eq.s32.totalorder %v450_v59, %v474_v21  ;;  %v567_v23 = vsel %vm475_vm15, 1.0, %v624_v0 }
 0x1f7   : > { %v568_v26 = vsel %vm476_vm0, 1.0, %v624_v0 }
 0x1ff   : > { %v613_v22 = vpop.eup %612 }
 0x200   : > { %v615_v24 = vpop.eup %614  ;;  %v493_v25 = vmul.f32 %v613_v22, %v567_v23 }
 0x201   : > { %v494_v27 = vmul.f32 %v615_v24, %v568_v26 }
 0x202   : > { %495 = vst [vmem:[%s224_s14] sm:$0x1f] %v493_v25 }
 0x203   : > { %496 = vst [vmem:[%s224_s14 + $0x8] sm:$0x1f] %v494_v27 }
 0x204 PF: > { %s15_s18 = sadd.s32 1, %s622_s18  }
 0x205   : > { %p12_p4 = scmp.ge.s32.totalorder %s15_s18, 4  }
 0x207   :  { %14 = sbr.rel (!%p12_p4) target bundleno = 1 (0x1), region = 70 }

</bundles_post_ra>
